<compile_context>
chip_gen: v7x
topology: tpu7x:2x2x1
jax: 0.10.0
libtpu: 0.0.40
codegen_flags: <defaults>
</compile_context>

<pallas_src>
import jax
import jax.numpy as jnp
from jax.experimental import pallas as pl
from jax.experimental.pallas import tpu as pltpu

# ----------------------------- static config --------------------------------
D_MODEL = 32
NUM_JOINTS = 4
SEQ_LEN = 8            # T
BATCH = 2              # B
LANE = 128             # TPU lane width
PACKED = NUM_JOINTS * D_MODEL          # 128 -> exactly one lane tile
# Rows per grid step when B*T is large:
#   2(in+out) * 2(double-buffer) * (512*128*4 B) + 128 KiB weights ≈ 1.2 MiB
#   -> comfortably inside the scoped VMEM limit on v5e/v6e (128 MiB) and
#      v7x (64 MiB total / 32 MiB scoped default).
ROW_TILE = 512
F32 = jnp.float32


def _round_up(n, m):
    return ((n + m - 1) // m) * m


# --------------------------------- kernel ------------------------------------
def ffn_kernel(x_ref, w_ref, b_ref, o_ref):
    """x_ref: (tile, P) f32;  w_ref: (2, P, P) block-diag (bf16 or f32);
    b_ref: (2, P) f32;  o_ref: (tile, P) f32."""
    wdt = w_ref.dtype
    x = x_ref[...].astype(wdt)                              # no-op for f32 slabs
    h = jnp.dot(x, w_ref[0], preferred_element_type=jnp.float32)
    h = jnp.maximum(h + b_ref[0:1, :], 0.0)                 # bias + ReLU in f32
    y = jnp.dot(h.astype(wdt), w_ref[1], preferred_element_type=jnp.float32)
    o_ref[...] = (y + b_ref[1:2, :]).astype(o_ref.dtype)


# ------------------------- init-time parameter packing -----------------------
def _block_diag(w):
    """(N, D, D) per-joint weights -> (N*D, N*D) block-diagonal matrix."""
    n, d, _ = w.shape
    eye = jnp.eye(n, dtype=w.dtype)
    return jnp.einsum('jab,jk->jakb', w, eye).reshape(n * d, n * d)


def pack_params(w1, b1, w2, b2, weight_dtype=jnp.bfloat16):
    """Pack per-joint Linear params into MXU-friendly slabs.

    Call ONCE at parameter-init time; the forward pass consumes the packed
    slabs directly (no per-call repacking)."""
    n, d, _ = w1.shape
    p = n * d
    assert p % LANE == 0, "num_joints * d_model must be a multiple of 128 lanes"
    w_slab = jnp.stack([_block_diag(w1), _block_diag(w2)]).astype(weight_dtype)
    b_slab = jnp.stack([b1.reshape(p), b2.reshape(p)]).astype(F32)
    return w_slab, b_slab


# -------------------------------- forward ------------------------------------
@jax.jit
def pointwise_feed_forward(x, w_slab, b_slab):
    """Equivalent of PointWiseFeedForward.forward.

    x      : (B, T, N, D)       activations (joints on axis 2, features last)
    w_slab : (2, N*D, N*D)      pre-packed block-diagonal weights (pack_params)
    b_slab : (2, N*D)           pre-packed biases
    returns (B, T, N, D) with out[:, :, j, :] = ff2_j(relu(ff1_j(x[:, :, j, :])))
    """
    B, T, N, D = x.shape
    P = N * D
    assert P == w_slab.shape[-1] == b_slab.shape[-1]
    M = B * T

    x2d = x.reshape(M, P)                                   # lane-dense activations
    tile = min(ROW_TILE, _round_up(M, 8))
    Mp = _round_up(M, tile)
    if Mp != M:                                             # pad rows; sliced off below
        x2d = jnp.pad(x2d, ((0, Mp - M), (0, 0)))

    cost = pl.CostEstimate(
        flops=2 * 2 * Mp * P * P,                           # two (Mp,P)x(P,P) matmuls
        bytes_accessed=2 * Mp * P * 4                       # x in + y out
        + 2 * P * P * w_slab.dtype.itemsize                 # weight slab
        + 2 * P * 4,                                        # biases
        transcendentals=0,
    )

    y2d = pl.pallas_call(
        ffn_kernel,
        out_shape=jax.ShapeDtypeStruct((Mp, P), F32),
        grid=(Mp // tile,),
        in_specs=[
            pl.BlockSpec((tile, P), lambda i: (i, 0)),
            pl.BlockSpec((2, P, P), lambda i: (0, 0, 0)),   # weights VMEM-resident
            pl.BlockSpec((2, P), lambda i: (0, 0)),         # biases VMEM-resident
        ],
        out_specs=pl.BlockSpec((tile, P), lambda i: (i, 0)),
        compiler_params=pltpu.CompilerParams(dimension_semantics=("parallel",)),
        cost_estimate=cost,
    )(x2d, w_slab, b_slab)

    return y2d[:M].reshape(B, T, N, D)


# ----------------------------- reference + main -------------------------------
def _reference(x, w1, b1, w2, b2):
    hp = jax.lax.Precision.HIGHEST
    outs = []
    for j in range(w1.shape[0]):
        hj = jnp.maximum(
            jnp.einsum('btd,de->bte', x[:, :, j, :], w1[j], precision=hp) + b1[j],
            0.0)
        outs.append(jnp.einsum('btd,de->bte', hj, w2[j], precision=hp) + b2[j])
    return jnp.stack(outs, axis=2)


if __name__ == "__main__":
    key = jax.random.PRNGKey(0)
    kx, k1, k2, kb1, kb2, kxl = jax.random.split(key, 6)
    x = jax.random.normal(kx, (BATCH, SEQ_LEN, NUM_JOINTS, D_MODEL), F32)
    w1 = 0.08 * jax.random.normal(k1, (NUM_JOINTS, D_MODEL, D_MODEL), F32)
    w2 = 0.08 * jax.random.normal(k2, (NUM_JOINTS, D_MODEL, D_MODEL), F32)
    b1 = 0.02 * jax.random.normal(kb1, (NUM_JOINTS, D_MODEL), F32)
    b2 = 0.02 * jax.random.normal(kb2, (NUM_JOINTS, D_MODEL), F32)

    ref = _reference(x, w1, b1, w2, b2)

    # --- default path: bf16 packed weights (packed ONCE, reused per call) -----
    w_bf16, b_pack = pack_params(w1, b1, w2, b2, weight_dtype=jnp.bfloat16)
    out = pointwise_feed_forward(x, w_bf16, b_pack)
    jax.block_until_ready(out)
    assert out.shape == (BATCH, SEQ_LEN, NUM_JOINTS, D_MODEL)
    assert bool(jnp.all(jnp.isfinite(out)))
    # Tolerance relaxed DELIBERATELY for bf16 weights (expected |err| ~ 3e-3).
    assert bool(jnp.allclose(out, ref, atol=3e-2, rtol=3e-2))

    # --- f32 packed weights: tighter check -------------------------------------
    w_f32, _ = pack_params(w1, b1, w2, b2, weight_dtype=F32)
    out_f32 = pointwise_feed_forward(x, w_f32, b_pack)
    assert bool(jnp.allclose(out_f32, ref, atol=1e-2, rtol=1e-2))

    # --- larger batch exercises the row grid (multi-tile, padded, "parallel") --
    xl = jax.random.normal(kxl, (8, 160, NUM_JOINTS, D_MODEL), F32)   # M = 1280
    out_l = pointwise_feed_forward(xl, w_f32, b_pack)
    ref_l = _reference(xl, w1, b1, w2, b2)
    assert bool(jnp.allclose(out_l, ref_l, atol=1e-2, rtol=1e-2))

    print("KERNEL_OK")
</pallas_src>

<mosaic_0001>
module attributes {stable_mosaic.version = 11 : i64} {
  func.func @ffn_kernel(%arg0: i32, %arg1: memref<16x128xf32, #tpu.memory_space<vmem>>, %arg2: memref<2x128x128xbf16, #tpu.memory_space<vmem>>, %arg3: memref<2x128xf32, #tpu.memory_space<vmem>>, %arg4: memref<16x128xf32, #tpu.memory_space<vmem>>) attributes {dimension_semantics = [#tpu.dimension_semantics<parallel>], iteration_bounds = array<i64: 1>, scalar_prefetch = 0 : i64, scratch_operands = 0 : i64, tpu.core_type = #tpu.core_type<tc>, window_params = [{transform_indices = @transform_0, window_bounds = array<i64: 16, 128>}, {pipeline_mode = #tpu.pipeline_mode<synchronous>, transform_indices = @transform_1, window_bounds = array<i64: 2, 128, 128>}, {pipeline_mode = #tpu.pipeline_mode<synchronous>, transform_indices = @transform_2, window_bounds = array<i64: 2, 128>}, {transform_indices = @transform_3, window_bounds = array<i64: 16, 128>}]} {
    %c0 = arith.constant 0 : index
    %c0_0 = arith.constant 0 : index
    %0 = vector.load %arg1[%c0, %c0_0] : memref<16x128xf32, #tpu.memory_space<vmem>>, vector<16x128xf32>
    %1 = arith.truncf %0 : vector<16x128xf32> to vector<16x128xbf16>
    %c0_1 = arith.constant 0 : index
    %c0_2 = arith.constant 0 : index
    %c0_3 = arith.constant 0 : index
    %2 = vector.load %arg2[%c0_1, %c0_2, %c0_3] : memref<2x128x128xbf16, #tpu.memory_space<vmem>>, vector<1x128x128xbf16>
    %3 = vector.shape_cast %2 : vector<1x128x128xbf16> to vector<128x128xbf16>
    %cst = arith.constant dense<0.000000e+00> : vector<16x128xf32>
    %4 = tpu.matmul %1, %3, %cst {dimension_numbers = #tpu.dot_dimension_numbers<[1], [0], [0], [1], [0, 0, 1, 1], [], []>} : vector<16x128xbf16>, vector<128x128xbf16>, vector<16x128xf32> -> vector<16x128xf32>
    %c0_4 = arith.constant 0 : index
    %c0_5 = arith.constant 0 : index
    %5 = vector.load %arg3[%c0_4, %c0_5] : memref<2x128xf32, #tpu.memory_space<vmem>>, vector<1x128xf32>
    %6 = vector.broadcast %5 : vector<1x128xf32> to vector<16x128xf32>
    %7 = arith.addf %4, %6 : vector<16x128xf32>
    %cst_6 = arith.constant 0.000000e+00 : f32
    %8 = vector.broadcast %cst_6 : f32 to vector<16x128xf32>
    %9 = arith.maximumf %7, %8 : vector<16x128xf32>
    %10 = arith.truncf %9 : vector<16x128xf32> to vector<16x128xbf16>
    %c1 = arith.constant 1 : index
    %c0_7 = arith.constant 0 : index
    %c0_8 = arith.constant 0 : index
    %11 = vector.load %arg2[%c1, %c0_7, %c0_8] : memref<2x128x128xbf16, #tpu.memory_space<vmem>>, vector<1x128x128xbf16>
    %12 = vector.shape_cast %11 : vector<1x128x128xbf16> to vector<128x128xbf16>
    %cst_9 = arith.constant dense<0.000000e+00> : vector<16x128xf32>
    %13 = tpu.matmul %10, %12, %cst_9 {dimension_numbers = #tpu.dot_dimension_numbers<[1], [0], [0], [1], [0, 0, 1, 1], [], []>} : vector<16x128xbf16>, vector<128x128xbf16>, vector<16x128xf32> -> vector<16x128xf32>
    %c1_10 = arith.constant 1 : index
    %c0_11 = arith.constant 0 : index
    %14 = vector.load %arg3[%c1_10, %c0_11] : memref<2x128xf32, #tpu.memory_space<vmem>>, vector<1x128xf32>
    %15 = vector.broadcast %14 : vector<1x128xf32> to vector<16x128xf32>
    %16 = arith.addf %13, %15 : vector<16x128xf32>
    %c0_12 = arith.constant 0 : index
    %c0_13 = arith.constant 0 : index
    %17 = vector.load %arg4[%c0_12, %c0_13] : memref<16x128xf32, #tpu.memory_space<vmem>>, vector<16x128xf32>
    tpu.vector_store %arg4[%c0_12, %c0_13], %16 {strides = array<i32>} : memref<16x128xf32, #tpu.memory_space<vmem>>, vector<16x128xf32>,
    return
  }
  func.func @transform_0(%arg0: i32) -> (i32, i32) {
    %c0_i32 = arith.constant 0 : i32
    %c0_i32_0 = arith.constant 0 : i32
    return %arg0, %c0_i32 : i32, i32
  }
  func.func @transform_1(%arg0: i32) -> (i32, i32, i32) {
    %c0_i32 = arith.constant 0 : i32
    %c0_i32_0 = arith.constant 0 : i32
    %c0_i32_1 = arith.constant 0 : i32
    %c0_i32_2 = arith.constant 0 : i32
    return %c0_i32, %c0_i32_0, %c0_i32_1 : i32, i32, i32
  }
  func.func @transform_2(%arg0: i32) -> (i32, i32) {
    %c0_i32 = arith.constant 0 : i32
    %c0_i32_0 = arith.constant 0 : i32
    %c0_i32_1 = arith.constant 0 : i32
    return %c0_i32, %c0_i32_0 : i32, i32
  }
  func.func @transform_3(%arg0: i32) -> (i32, i32) {
    %c0_i32 = arith.constant 0 : i32
    %c0_i32_0 = arith.constant 0 : i32
    return %arg0, %c0_i32 : i32, i32
  }
}

</mosaic_0001>

<bundles_post_ra>
// kernel: pointwise_feed_forward.1
= control target key start
LH: loop header
LB: loop body
LE: loop exit
PB: predicated region body
PF: predicated region fallthrough
CT: control target
= control target key end

     0   :  { %8 = vsyncpa [#allocation3], 0  ;;  %s384_s12 = smov [#allocation2]   ;;  %s439_s0 = inlined_call_operand.vmem [shape: f32[16,128], index: 0, kind: input, shape index: {}]   ;;  %s440_s1 = inlined_call_operand.hbm [shape: bf16[2,128,128], index: 1, kind: input, shape index: {}]   ;;  %s441_s2 = inlined_call_operand.vmem [shape: f32[2,128], index: 2, kind: input, shape index: {}]   ;;  %s442_s3 = inlined_call_operand.vmem [shape: f32[16,128], index: 3, kind: output, shape index: {}]  }
   0x1   :  { %s16_s13 = sshll.u32 %s384_s12, 4  ;;  %s360_s16 = scalar_lea.hbm %s440_s1, 2048  ;;  %s17_s13 = int_to_ptr.vmem [resolvable:$true] %s16_s13 }
   0x2   :  { %p361_p0 = scmp.ne.s32.totalorder %s440_s1, %s360_s16  ;;  %p364_p1 = scmp.lt.u32.totalorder %s360_s16, %s440_s1 }
   0x4   :  { %p366_p2 = pnand %p364_p1, %p361_p0 }
   0x6   :  { %369 = shalt.err (!%p366_p2)
}
   0x7   :  { %s370_s21 = scalar_lea.vmem %s17_s13, 2048  ;;  %p375_p4 = scmp.lt.s32.totalorder %s17_s13, %s17_s13 }
   0x8   :  { %p371_p3 = scmp.ne.s32.totalorder %s17_s13, %s370_s21  ;;  %p376_p5 = scmp.lt.s32.totalorder %s370_s21, %s370_s21 }
   0xa   :  { %p377_p6 = por %p376_p5, %p375_p4 }
   0xc   :  { %p378_p7 = pnand %p377_p6, %p371_p3 }
   0xe   :  { %381 = shalt.err (!%p378_p7)
}
   0xf   :  { %s385_s22 = smov 64   ;;  %s386_s23 = smov 4  }
  0x10   :  { %22 = dma.hbm_to_vmem [thread:$0]  %s440_s1, 2048, %s17_s13, [#allocation3], %s385_s22, %s385_s22, %s386_s23  }
  0x11   :  { %382 = dma.done.wait [#allocation3], 2048  }
  0x12   :  { %383 = vsyncadd [#allocation3], 4294965248  ;;  %v387_v0 = vmov 0.0   ;;  %vm388_vm0 = vmmov 0   ;;  %v344_v1 = vld [vmem:[#allocation2] sm:$0xff]   ;;  %v345_v2 = vld [vmem:[#allocation2 + $0x8] sm:$0xff]  }
  0x13   :  { %299 = vmatprep.subr.bf16.mxu0 %v387_v0  ;;  %315 = vmatprep.mubr.msk.bf16.mxu0 %vm388_vm0, %v387_v0  ;;  %v346_v3 = vld [vmem:[#allocation2 + $0x10] sm:$0xff]   ;;  %v352_v4 = vld [vmem:[#allocation2 + $0x40] sm:$0xff]   ;;  %v347_v5 = vld [vmem:[#allocation2 + $0x18] sm:$0xff]  }
  0x14   :  { %319 = vmatprep.subr.bf16.mxu1 %v387_v0  ;;  %335 = vmatprep.mubr.msk.bf16.mxu1 %vm388_vm0, %v387_v0  ;;  %v353_v6 = vld [vmem:[#allocation2 + $0x48] sm:$0xff]   ;;  %v348_v7 = vld [vmem:[#allocation2 + $0x20] sm:$0xff]   ;;  %v354_v8 = vld [vmem:[#allocation2 + $0x50] sm:$0xff]  }
  0x15   :  { %300 = vmatpush3.bf16.msra.mxu0 %v344_v1  ;;  %320 = vmatpush3.bf16.msra.mxu1 %v352_v4  ;;  %v349_v9 = vld [vmem:[#allocation2 + $0x28] sm:$0xff]   ;;  %v355_v10 = vld [vmem:[#allocation2 + $0x58] sm:$0xff]   ;;  %v350_v11 = vld [vmem:[#allocation2 + $0x30] sm:$0xff]  }
  0x16   :  { %301 = vmatprep.subr.bf16.mxu0 %v387_v0  ;;  %321 = vmatprep.subr.bf16.mxu1 %v387_v0  ;;  %v356_v12 = vld [vmem:[#allocation2 + $0x60] sm:$0xff]   ;;  %v351_v13 = vld [vmem:[#allocation2 + $0x38] sm:$0xff]   ;;  %v30_v15 = vld [vmem:[%s439_s0 + $0x8] sm:$0xff] }
  0x17   :  { %v29_v14 = vld [vmem:[%s439_s0] sm:$0xff]  ;;  %v357_v16 = vld [vmem:[#allocation2 + $0x68] sm:$0xff]   ;;  %v358_v18 = vld [vmem:[#allocation2 + $0x70] sm:$0xff]  }
  0x18   :  { %v31_v17 = vpack.c.bf16 %v30_v15, %v29_v14  ;;  %v359_v19 = vld [vmem:[#allocation2 + $0x78] sm:$0xff]   ;;  %v263_v20 = vld [vmem:[%s441_s2] ss:$0 sm:$0xff]  ;;  %v272_v30 = vld [vmem:[%s441_s2 + $0x1] ss:$0 sm:$0xff] }
  0x19   :  { %302 = vmatpush3.bf16.msra.mxu0 %v345_v2  ;;  %322 = vmatpush3.bf16.msra.mxu1 %v353_v6 }
  0x1a   :  { %303 = vmatprep.subr.bf16.mxu0 %v387_v0  ;;  %323 = vmatprep.subr.bf16.mxu1 %v387_v0 }
  0x1d   :  { %304 = vmatpush3.bf16.msra.mxu0 %v346_v3  ;;  %324 = vmatpush3.bf16.msra.mxu1 %v354_v8 }
  0x1e   :  { %305 = vmatprep.subr.bf16.mxu0 %v387_v0  ;;  %325 = vmatprep.subr.bf16.mxu1 %v387_v0 }
  0x21   :  { %306 = vmatpush3.bf16.msra.mxu0 %v347_v5  ;;  %326 = vmatpush3.bf16.msra.mxu1 %v355_v10 }
  0x22   :  { %307 = vmatprep.subr.bf16.mxu0 %v387_v0  ;;  %327 = vmatprep.subr.bf16.mxu1 %v387_v0 }
  0x25   :  { %308 = vmatpush3.bf16.msra.mxu0 %v348_v7  ;;  %328 = vmatpush3.bf16.msra.mxu1 %v356_v12 }
  0x26   :  { %309 = vmatprep.subr.bf16.mxu0 %v387_v0  ;;  %329 = vmatprep.subr.bf16.mxu1 %v387_v0 }
  0x29   :  { %310 = vmatpush3.bf16.msra.mxu0 %v349_v9  ;;  %330 = vmatpush3.bf16.msra.mxu1 %v357_v16 }
  0x2a   :  { %311 = vmatprep.subr.bf16.mxu0 %v387_v0  ;;  %331 = vmatprep.subr.bf16.mxu1 %v387_v0 }
  0x2d   :  { %312 = vmatpush3.bf16.msra.mxu0 %v350_v11  ;;  %332 = vmatpush3.bf16.msra.mxu1 %v358_v18 }
  0x2e   :  { %313 = vmatprep.subr.bf16.mxu0 %v387_v0  ;;  %333 = vmatprep.subr.bf16.mxu1 %v387_v0 }
  0x31   :  { %314 = vmatpush3.bf16.msra.mxu0 %v351_v13  ;;  %334 = vmatpush3.bf16.msra.mxu1 %v359_v19 }
  0x34   :  { %316 = vmatmul.mubr.bf16.vlgmr.msra.gmra.mrb[0].mxu0 %v31_v17 }
 0x107   :  { %v135_v21 = vpop.f32.mrb[0].mxu0 }
 0x108   :  { %v136_v22 = vadd.f32 %v263_v20, %v135_v21  ;;  %v317_v23 = vpop.f32.mrb[1].mxu0 }
 0x109   :  { %v138_v24 = vpop.f32.mrb[2].mxu0 }
 0x10a   :  { %v139_v25 = vadd.f32 %v263_v20, %v138_v24  ;;  %v318_v26 = vpop.f32.mrb[3].mxu0  ;;  %v142_v27 = vmax.f32 %v136_v22, 0.0 }
 0x10c   :  { %v143_v28 = vmax.f32 %v139_v25, 0.0 }
 0x10e   :  { %v144_v29 = vpack.c.bf16 %v143_v28, %v142_v27 }
 0x110   :  { %336 = vmatmul.mubr.bf16.vlgmr.msra.gmra.mrb[0].mxu1 %v144_v29 }
 0x1e3   :  { %v249_v31 = vpop.f32.mrb[0].mxu1 }
 0x1e4   :  { %v250_v32 = vadd.f32 %v272_v30, %v249_v31  ;;  %v337_v33 = vpop.f32.mrb[1].mxu1 }
 0x1e5   :  { %v252_v34 = vpop.f32.mrb[2].mxu1 }
 0x1e6   :  { %256 = vst [vmem:[%s442_s3] sm:$0xff] %v250_v32  ;;  %v253_v35 = vadd.f32 %v272_v30, %v252_v34  ;;  %v338_v36 = vpop.f32.mrb[3].mxu1 }
 0x1e8   :  { %257 = vst [vmem:[%s442_s3 + $0x8] sm:$0xff] %v253_v35 }
 0x1e9   :  { %262 = vsyncpa [#allocation3], 1 }

</bundles_post_ra>
